<compile_context>
chip_gen: v6e
topology: v6e:2x2x1
jax: 0.10.0
libtpu: 0.0.40
codegen_flags: <defaults>
</compile_context>

<pallas_src>
import functools

import jax
import jax.numpy as jnp
from jax.experimental import pallas as pl
from jax.experimental.pallas import tpu as pltpu

LANES = 128            # lane-dense minor dim (multiple of 128 -> unmasked vst)
ROWS_PER_BLOCK = 1024  # 1024 x 128 = 131072 pixels (~512 KiB/f32 operand) per grid step
NEG_SLOPE = 0.2
LOG_CLAMP = -100.0     # PyTorch BCELoss clamps log terms at -100


def _bce_kernel(params_ref, d_ref, y_ref, p_ref, psum_ref, *,
                total_px, block_rows, lanes):
    i = pl.program_id(0)

    # Scalar 1x1-conv parameters from SMEM.
    w1 = params_ref[0]
    b1 = params_ref[1]
    w2 = params_ref[2]
    b2 = params_ref[3]

    d = d_ref[...]          # (block_rows, lanes) f32
    y = y_ref[...]          # (block_rows, lanes) f32

    # net(d): conv1x1 -> leaky_relu(0.2) -> conv1x1 -> sigmoid  (pure VPU/EUP)
    a = w1 * d + b1
    h = jnp.where(a > 0, a, NEG_SLOPE * a)
    z = w2 * h + b2
    p = jax.nn.sigmoid(z)
    p_ref[...] = p          # logit map (== module's self.logit)

    # Validity mask: flat pixel index < true pixel count (covers both the
    # lane-padding tail and the ragged last row-block Pallas reads OOB).
    rows = jax.lax.broadcasted_iota(jnp.int32, d.shape, 0)
    cols = jax.lax.broadcasted_iota(jnp.int32, d.shape, 1)
    flat_idx = (i * block_rows + rows) * lanes + cols
    valid = flat_idx < total_px

    # BCELoss with PyTorch's log clamp at -100.
    log_p = jnp.maximum(jnp.log(p), LOG_CLAMP)
    log_1mp = jnp.maximum(jnp.log(1.0 - p), LOG_CLAMP)
    bce = -(y * log_p + (1.0 - y) * log_1mp)
    bce = jnp.where(valid, bce, 0.0)

    # Per-block partial sum, written into row 0 of an (8, lanes) tile so the
    # output BlockSpec stays (8,128)-aligned and the grid axis stays parallel.
    col_sums = jnp.sum(bce, axis=0)                         # (lanes,)
    row_ids = jax.lax.broadcasted_iota(jnp.int32, (8, lanes), 0)
    psum_ref[...] = jnp.where(row_ids == 0, col_sums[None, :], 0.0)


@jax.jit
def bce_scoring_forward(d, y, params):
    """d, y: (N, 1, H, W) float32. Returns (scalar BCE loss, logit map)."""
    w1, b1, w2, b2 = params
    N, C, H, W = d.shape
    assert C == 1, "BCEScoringLoss expects single-channel score maps"
    P = N * C * H * W

    params_vec = jnp.stack([w1, b1, w2, b2]).astype(jnp.float32)   # (4,) in SMEM

    d_flat = d.reshape(P).astype(jnp.float32)
    y_flat = y.reshape(P).astype(jnp.float32)

    # Pad only the ragged tail to a multiple of LANES (no pad at all when the
    # pixel count is already lane-aligned -> no extra HBM round trip).
    P_pad = pl.cdiv(P, LANES) * LANES
    if P_pad != P:
        d_flat = jnp.pad(d_flat, (0, P_pad - P))
        y_flat = jnp.pad(y_flat, (0, P_pad - P))
    R = P_pad // LANES
    d2 = d_flat.reshape(R, LANES)
    y2 = y_flat.reshape(R, LANES)

    block_rows = min(R, ROWS_PER_BLOCK)   # either full R, or a multiple of 8
    grid = pl.cdiv(R, block_rows)         # ragged last block is masked

    kernel = functools.partial(_bce_kernel, total_px=P,
                               block_rows=block_rows, lanes=LANES)

    p2, psums = pl.pallas_call(
        kernel,
        out_shape=(jax.ShapeDtypeStruct((R, LANES), jnp.float32),
                   jax.ShapeDtypeStruct((8 * grid, LANES), jnp.float32)),
        grid_spec=pltpu.PrefetchScalarGridSpec(
            num_scalar_prefetch=0,
            grid=(grid,),
            in_specs=[
                pl.BlockSpec(memory_space=pltpu.MemorySpace.SMEM),     # params (4,)
                pl.BlockSpec((block_rows, LANES), lambda i: (i, 0)),   # d
                pl.BlockSpec((block_rows, LANES), lambda i: (i, 0)),   # y
            ],
            out_specs=[
                pl.BlockSpec((block_rows, LANES), lambda i: (i, 0)),   # logit map
                pl.BlockSpec((8, LANES), lambda i: (i, 0)),            # partial sums
            ],
        ),
        compiler_params=pltpu.CompilerParams(
            dimension_semantics=("parallel",),
            vmem_limit_bytes=32 * 1024 * 1024),
    )(params_vec, d2, y2)

    loss = jnp.sum(psums) / P
    logit = p2.reshape(P_pad)[:P].reshape(N, C, H, W)
    return loss, logit


def init_params(key):
    """Synthetic scalar parameters for the two 1x1 Conv2d(1,1) layers."""
    k1, k2, k3, k4 = jax.random.split(key, 4)
    w1 = jax.random.normal(k1, (), jnp.float32) * 0.5 + 1.0
    b1 = jax.random.normal(k2, (), jnp.float32) * 0.1
    w2 = jax.random.normal(k3, (), jnp.float32) * 0.5 + 1.0
    b2 = jax.random.normal(k4, (), jnp.float32) * 0.1
    return (w1, b1, w2, b2)


def reference_forward(d, y, params):
    """Pure-JAX mirror of the PyTorch module for verification."""
    w1, b1, w2, b2 = params
    a = w1 * d + b1
    h = jnp.where(a > 0, a, NEG_SLOPE * a)
    z = w2 * h + b2
    p = jax.nn.sigmoid(z)
    log_p = jnp.maximum(jnp.log(p), LOG_CLAMP)
    log_1mp = jnp.maximum(jnp.log(1.0 - p), LOG_CLAMP)
    loss = jnp.mean(-(y * log_p + (1.0 - y) * log_1mp))
    return loss, p


if __name__ == "__main__":
    key = jax.random.PRNGKey(0)
    kp, kd, ky = jax.random.split(key, 3)

    params = init_params(kp)

    N, C, H, W = 2, 1, 16, 16
    d = jnp.abs(jax.random.normal(kd, (N, C, H, W), jnp.float32))
    y = jax.random.bernoulli(ky, 0.5, (N, C, H, W)).astype(jnp.float32)

    loss, logit = bce_scoring_forward(d, y, params)
    loss = jax.block_until_ready(loss)
    logit = jax.block_until_ready(logit)

    ref_loss, ref_logit = reference_forward(d, y, params)
    assert logit.shape == (N, C, H, W)
    assert jnp.allclose(logit, ref_logit, atol=1e-5, rtol=1e-5), "logit mismatch"
    assert jnp.allclose(loss, ref_loss, atol=1e-5, rtol=1e-5), "loss mismatch"

    print("KERNEL_OK")
</pallas_src>

<mosaic_0001>
module attributes {stable_mosaic.version = 11 : i64} {
  func.func @_bce_kernel(%arg0: i32, %arg1: memref<4xf32, #tpu.memory_space<smem>>, %arg2: memref<4x128xf32, #tpu.memory_space<vmem>>, %arg3: memref<4x128xf32, #tpu.memory_space<vmem>>, %arg4: memref<4x128xf32, #tpu.memory_space<vmem>>, %arg5: memref<8x128xf32, #tpu.memory_space<vmem>>) attributes {dimension_semantics = [#tpu.dimension_semantics<parallel>], iteration_bounds = array<i64: 1>, scalar_prefetch = 0 : i64, scratch_operands = 0 : i64, tpu.core_type = #tpu.core_type<tc>, window_params = [{transform_indices = @transform_0, window_bounds = array<i64: 4>}, {transform_indices = @transform_1, window_bounds = array<i64: 4, 128>}, {transform_indices = @transform_2, window_bounds = array<i64: 4, 128>}, {transform_indices = @transform_3, window_bounds = array<i64: 4, 128>}, {transform_indices = @transform_4, window_bounds = array<i64: 8, 128>}]} {
    %c0 = arith.constant 0 : index
    %0 = memref.load %arg1[%c0] : memref<4xf32, #tpu.memory_space<smem>>
    %c1 = arith.constant 1 : index
    %1 = memref.load %arg1[%c1] : memref<4xf32, #tpu.memory_space<smem>>
    %c2 = arith.constant 2 : index
    %2 = memref.load %arg1[%c2] : memref<4xf32, #tpu.memory_space<smem>>
    %c3 = arith.constant 3 : index
    %3 = memref.load %arg1[%c3] : memref<4xf32, #tpu.memory_space<smem>>
    %c0_0 = arith.constant 0 : index
    %c0_1 = arith.constant 0 : index
    %4 = vector.load %arg2[%c0_0, %c0_1] : memref<4x128xf32, #tpu.memory_space<vmem>>, vector<4x128xf32>
    %c0_2 = arith.constant 0 : index
    %c0_3 = arith.constant 0 : index
    %5 = vector.load %arg3[%c0_2, %c0_3] : memref<4x128xf32, #tpu.memory_space<vmem>>, vector<4x128xf32>
    %6 = vector.broadcast %0 : f32 to vector<4x128xf32>
    %7 = arith.mulf %6, %4 : vector<4x128xf32>
    %8 = vector.broadcast %1 : f32 to vector<4x128xf32>
    %9 = arith.addf %7, %8 : vector<4x128xf32>
    %cst = arith.constant 0.000000e+00 : f32
    %10 = vector.broadcast %cst : f32 to vector<4x128xf32>
    %11 = arith.cmpf ogt, %9, %10 : vector<4x128xf32>
    %cst_4 = arith.constant 2.000000e-01 : f32
    %12 = vector.broadcast %cst_4 : f32 to vector<4x128xf32>
    %13 = arith.mulf %12, %9 : vector<4x128xf32>
    %14 = arith.select %11, %9, %13 : vector<4x128xi1>, vector<4x128xf32>
    %15 = vector.broadcast %2 : f32 to vector<4x128xf32>
    %16 = arith.mulf %15, %14 : vector<4x128xf32>
    %17 = vector.broadcast %3 : f32 to vector<4x128xf32>
    %18 = arith.addf %16, %17 : vector<4x128xf32>
    %19 = arith.negf %18 : vector<4x128xf32>
    %20 = math.exp %19 : vector<4x128xf32>
    %cst_5 = arith.constant 1.000000e+00 : f32
    %21 = vector.broadcast %cst_5 : f32 to vector<4x128xf32>
    %22 = arith.addf %21, %20 : vector<4x128xf32>
    %23 = arith.divf %21, %22 : vector<4x128xf32>
    %c0_6 = arith.constant 0 : index
    %c0_7 = arith.constant 0 : index
    %24 = vector.load %arg4[%c0_6, %c0_7] : memref<4x128xf32, #tpu.memory_space<vmem>>, vector<4x128xf32>
    tpu.vector_store %arg4[%c0_6, %c0_7], %23 {strides = array<i32>} : memref<4x128xf32, #tpu.memory_space<vmem>>, vector<4x128xf32>,
    %25 = tpu.iota {dimensions = array<i32: 0>} : vector<4x128xi32>
    %26 = tpu.iota {dimensions = array<i32: 1>} : vector<4x128xi32>
    %c4_i32 = arith.constant 4 : i32
    %27 = arith.muli %arg0, %c4_i32 : i32
    %28 = vector.broadcast %27 : i32 to vector<4x128xi32>
    %29 = arith.addi %28, %25 : vector<4x128xi32>
    %c128_i32 = arith.constant 128 : i32
    %30 = vector.broadcast %c128_i32 : i32 to vector<4x128xi32>
    %31 = arith.muli %29, %30 : vector<4x128xi32>
    %32 = arith.addi %31, %26 : vector<4x128xi32>
    %c512_i32 = arith.constant 512 : i32
    %33 = vector.broadcast %c512_i32 : i32 to vector<4x128xi32>
    %34 = arith.cmpi slt, %32, %33 : vector<4x128xi32>
    %35 = math.log %23 : vector<4x128xf32>
    %cst_8 = arith.constant -1.000000e+02 : f32
    %36 = vector.broadcast %cst_8 : f32 to vector<4x128xf32>
    %37 = arith.maximumf %35, %36 : vector<4x128xf32>
    %cst_9 = arith.constant 1.000000e+00 : f32
    %38 = vector.broadcast %cst_9 : f32 to vector<4x128xf32>
    %39 = arith.subf %38, %23 : vector<4x128xf32>
    %40 = math.log %39 : vector<4x128xf32>
    %cst_10 = arith.constant -1.000000e+02 : f32
    %41 = vector.broadcast %cst_10 : f32 to vector<4x128xf32>
    %42 = arith.maximumf %40, %41 : vector<4x128xf32>
    %43 = arith.mulf %5, %37 : vector<4x128xf32>
    %cst_11 = arith.constant 1.000000e+00 : f32
    %44 = vector.broadcast %cst_11 : f32 to vector<4x128xf32>
    %45 = arith.subf %44, %5 : vector<4x128xf32>
    %46 = arith.mulf %45, %42 : vector<4x128xf32>
    %47 = arith.addf %43, %46 : vector<4x128xf32>
    %cst_12 = arith.constant 0.000000e+00 : f32
    %48 = vector.broadcast %cst_12 : f32 to vector<4x128xf32>
    %49 = arith.subf %48, %47 : vector<4x128xf32>
    %cst_13 = arith.constant 0.000000e+00 : f32
    %50 = vector.broadcast %cst_13 : f32 to vector<4x128xf32>
    %51 = arith.select %34, %49, %50 : vector<4x128xi1>, vector<4x128xf32>
    %cst_14 = arith.constant dense<0.000000e+00> : vector<128xf32>
    %52 = vector.multi_reduction <add>, %51, %cst_14 [0] : vector<4x128xf32> to vector<128xf32>
    %53 = tpu.iota {dimensions = array<i32: 0>} : vector<8x128xi32>
    %c0_i32 = arith.constant 0 : i32
    %54 = vector.broadcast %c0_i32 : i32 to vector<8x128xi32>
    %55 = arith.cmpi eq, %53, %54 : vector<8x128xi32>
    %56 = vector.shape_cast %52 : vector<128xf32> to vector<1x128xf32>
    %cst_15 = arith.constant 0.000000e+00 : f32
    %57 = vector.shape_cast %56 : vector<1x128xf32> to vector<1x128xf32>
    %58 = vector.broadcast %57 : vector<1x128xf32> to vector<8x128xf32>
    %59 = vector.broadcast %cst_15 : f32 to vector<8x128xf32>
    %60 = arith.select %55, %58, %59 : vector<8x128xi1>, vector<8x128xf32>
    %c0_16 = arith.constant 0 : index
    %c0_17 = arith.constant 0 : index
    %61 = vector.load %arg5[%c0_16, %c0_17] : memref<8x128xf32, #tpu.memory_space<vmem>>, vector<8x128xf32>
    tpu.vector_store %arg5[%c0_16, %c0_17], %60 {strides = array<i32>} : memref<8x128xf32, #tpu.memory_space<vmem>>, vector<8x128xf32>,
    return
  }
  func.func @transform_0(%arg0: i32) -> i32 {
    %c0_i32 = arith.constant 0 : i32
    %c0_i32_0 = arith.constant 0 : i32
    return %c0_i32 : i32
  }
  func.func @transform_1(%arg0: i32) -> (i32, i32) {
    %c0_i32 = arith.constant 0 : i32
    %c0_i32_0 = arith.constant 0 : i32
    return %arg0, %c0_i32 : i32, i32
  }
  func.func @transform_2(%arg0: i32) -> (i32, i32) {
    %c0_i32 = arith.constant 0 : i32
    %c0_i32_0 = arith.constant 0 : i32
    return %arg0, %c0_i32 : i32, i32
  }
  func.func @transform_3(%arg0: i32) -> (i32, i32) {
    %c0_i32 = arith.constant 0 : i32
    %c0_i32_0 = arith.constant 0 : i32
    return %arg0, %c0_i32 : i32, i32
  }
  func.func @transform_4(%arg0: i32) -> (i32, i32) {
    %c0_i32 = arith.constant 0 : i32
    %c0_i32_0 = arith.constant 0 : i32
    return %arg0, %c0_i32 : i32, i32
  }
}

</mosaic_0001>

<bundles_post_ra>
// kernel: bce_scoring_forward.1
= control target key start
LH: loop header
LB: loop body
LE: loop exit
PB: predicated region body
PF: predicated region fallthrough
CT: control target
= control target key end

     0   :  { %10 = vsyncpa [#allocation3], 0  ;;  %s164_s0 = inlined_call_operand.vmem [shape: f32[4], index: 0, kind: input, shape index: {}]   ;;  %s165_s1 = inlined_call_operand.vmem [shape: f32[4,128], index: 1, kind: input, shape index: {}]   ;;  %s166_s2 = inlined_call_operand.vmem [shape: f32[4,128], index: 2, kind: input, shape index: {}]   ;;  %s167_s3 = inlined_call_operand.vmem [shape: f32[4,128], index: 3, kind: output, shape index: {0}]   ;;  %s168_s4 = inlined_call_operand.vmem [shape: f32[8,128], index: 4, kind: output, shape index: {1}]  }
   0x1   :  { %s17_s17 = sshll.u32 %s164_s0, 4  ;;  %s18_s17 = int_to_ptr.vmem [resolvable:$true] %s17_s17 }
   0x2   :  { %s109_s18 = scalar_lea.vmem %s18_s17, 16  ;;  %p114_p1 = scmp.lt.s32.totalorder %s18_s17, %s18_s17 }
   0x3   :  { %p110_p0 = scmp.ne.s32.totalorder %s18_s17, %s109_s18  ;;  %p115_p2 = scmp.lt.s32.totalorder %s109_s18, %s109_s18 }
   0x5   :  { %p116_p3 = por %p115_p2, %p114_p1 }
   0x7   :  { %p117_p4 = pnand %p116_p3, %p110_p0 }
   0x9   :  { %120 = shalt.err (!%p117_p4)
}
   0xa   :  { %s123_s19 = smov [#allocation2]  }
   0xb   :  { %20 = dma.vmem_to_smem %s18_s17, 16, %s123_s19, [#allocation3]  }
   0xc   :  { %121 = dma.done.wait [#allocation3], 16  }
   0xd   :  { %122 = vsyncadd [#allocation3], 4294967280 }
   0xe   :  { %28 = sfence }
   0xf   :  { %s29_s20 = sld [smem:[#allocation2]]  ;;  %v33_v0 = vld [vmem:[%s165_s1] sm:$0xf]  ;;  %v53_v16 = vlaneseq  ;;  %vm76_vm2 = vcmask 1043456  }
  0x10   :  { %s96_s21 = sld [smem:[#allocation2 + $0x1]]  ;;  %v34_v19 = vld [vmem:[%s166_s2] sm:$0xf] }
  0x11   :  { %s97_s22 = sld [smem:[#allocation2 + $0x2]]  ;;  %v54_v17 = vshrl.u32 %v53_v16, 7  ;;  %v56_v22 = vand.u32 127, %v53_v16  ;;  %v71_v26 = vsub.f32 1.0, %v34_v19 }
  0x12   :  { %s98_s0 = sld [smem:[#allocation2 + $0x3]] }
  0x13   :  { %v60_v23 = vmul.u32 128, %v54_v17  ;;  %vm84_vm3 = vcmp.eq.s32.totalorder %v54_v17, 0 }
  0x15   :  { %v35_v1 = vstv %s29_s20  ;;  %v61_v29 = vadd.s32 %v60_v23, %v56_v22 }
  0x16   :  { %v36_v2 = vmul.f32 %v35_v1, %v33_v0  ;;  %v37_v3 = vstv %s96_s21 }
  0x17   :  { %v42_v6 = vstv %s97_s22  ;;  %vm62_vm1 = vcmp.lt.s32.totalorder %v61_v29, 512 }
  0x18   :  { %v38_v4 = vadd.f32 %v37_v3, %v36_v2  ;;  %v44_v8 = vstv %s98_s0 }
  0x1a   :  { %vm39_vm0 = vcmp.gt.f32.partialorder %v38_v4, 0.0  ;;  %v40_v5 = vmul.f32 0.2, %v38_v4 }
  0x1c   :  { %v41_v7 = vsel %vm39_vm0, %v38_v4, %v40_v5 }
  0x1d   :  { %v43_v9 = vmul.f32 %v42_v6, %v41_v7 }
  0x1f   :  { %v45_v10 = vadd.f32 %v44_v8, %v43_v9 }
  0x21   :  { %v99_v11 = vmul.f32 -1.442695, %v45_v10 }
  0x23   :  { %101 = vpow2.f32 %v99_v11 }
  0x30   :  { %v102_v12 = vpop.eup %101 }
  0x31   :  { %v49_v13 = vadd.f32 1.0, %v102_v12 }
  0x33   :  { %103 = vrcp.f32 %v49_v13 }
  0x40   :  { %v104_v14 = vpop.eup %103 }
  0x41   :  { %52 = vst [vmem:[%s167_s3] sm:$0xf] %v104_v14  ;;  %105 = vlog2.f32 %v104_v14  ;;  %v66_v15 = vsub.f32 1.0, %v104_v14 }
  0x43   :  { %107 = vlog2.f32 %v66_v15 }
  0x4e   :  { %v106_v18 = vpop.eup %105 }
  0x4f   :  { %v64_v20 = vmul.f32 0.6931472, %v106_v18 }
  0x50   :  { %v108_v21 = vpop.eup %107 }
  0x51   :  { %v65_v24 = vmax.f32 %v64_v20, -100.0  ;;  %v68_v25 = vmul.f32 0.6931472, %v108_v21 }
  0x53   :  { %v69_v27 = vmax.f32 %v68_v25, -100.0  ;;  %v70_v28 = vmul.f32 %v65_v24, %v34_v19 }
  0x55   :  { %v72_v30 = vmul.f32 %v71_v26, %v69_v27 }
  0x57   :  { %v73_v31 = vadd.f32 %v72_v30, %v70_v28 }
  0x59   :  { %v74_v32 = vsub.f32 0.0, %v73_v31 }
  0x5b   :  { %v75_v33 = vsel %vm62_vm1, %v74_v32, 0.0 }
  0x5c   :  { %v77_v34 = vsel %vm76_vm2, %v75_v33, 0.0 }
  0x5d   :  { %v78_v35 = vrot.slane %v77_v34, 4 }
  0x5f   :  { %v79_v36 = vadd.f32 %v78_v35, %v77_v34 }
  0x61   :  { %v80_v37 = vrot.slane %v79_v36, 2 }
  0x63   :  { %v81_v38 = vadd.f32 %v80_v37, %v79_v36 }
  0x65   :  { %v82_v39 = vrot.slane %v81_v38, 1 }
  0x67   :  { %v83_v40 = vadd.f32 %v82_v39, %v81_v38 }
  0x69   :  { %v85_v41 = vsel %vm84_vm3, %v83_v40, 0.0 }
  0x6a   :  { %86 = vst [vmem:[%s168_s4] sm:$0xff] %v85_v41 }
  0x6b   :  { %95 = vsyncpa [#allocation3], 1 }

</bundles_post_ra>
